<compile_context>
chip_gen: v5e
topology: v5e:2x2
jax: 0.10.0
libtpu: 0.0.40
codegen_flags: <defaults>
</compile_context>

<pallas_src>
import jax
import jax.numpy as jnp
from jax.experimental import pallas as pl
from jax.experimental.pallas import tpu as pltpu


def _round_up(x: int, m: int) -> int:
    return ((x + m - 1) // m) * m


def autorec_kernel(x_ref, w1_ref, b1_ref, w2_ref, b2_ref, o_ref, z_ref):
    # Encoder: runs once per batch tile (inner D_in-tile index j == 0).
    @pl.when(pl.program_id(1) == 0)
    def _():
        # bf16 MXU operands (x cast in-kernel), f32 accumulation.
        z = jnp.dot(x_ref[...].astype(jnp.bfloat16), w1_ref[...],
                    preferred_element_type=jnp.float32)
        z = z + b1_ref[...]                         # b1 [1, H] f32, broadcasts
        # sigmoid = 1/(1+exp(-z)): exp + approx reciprocal both on the EUP slot
        z = pl.reciprocal(1.0 + jnp.exp(-z), approx=True)
        z_ref[...] = z.astype(jnp.bfloat16)         # decoder MXU input, kept in VMEM

    # Decoder: one lane-dense (TB, TN) output tile per grid step.
    y = jnp.dot(z_ref[...], w2_ref[...], preferred_element_type=jnp.float32)
    o_ref[...] = (y + b2_ref[...]).astype(o_ref.dtype)


def autorec_forward(x, w1, b1, w2, b2, *, max_batch_tile=256):
    """x: [B, D_in] f32; w1: [D_in, H]; b1: [1, H]; w2: [H, D_in]; b2: [1, D_in].

    Weights are stored as [in_features, out_features] (transpose of PyTorch's
    nn.Linear [out, in]) so the kernel computes plain x @ W + b.
    """
    B, D_in = x.shape
    H = w1.shape[1]
    out_dtype = x.dtype

    # ---- padding for lane/sublane alignment (zero padding is numerically neutral) ----
    D_pad = _round_up(D_in, 128)
    H_pad = _round_up(H, 128)
    TB = min(max_batch_tile, _round_up(B, 16))      # bf16 packs 2 rows per sublane
    B_pad = _round_up(B, TB)

    if D_pad != D_in:
        x = jnp.pad(x, ((0, 0), (0, D_pad - D_in)))
        w1 = jnp.pad(w1, ((0, D_pad - D_in), (0, 0)))
        w2 = jnp.pad(w2, ((0, 0), (0, D_pad - D_in)))
        b2 = jnp.pad(b2, ((0, 0), (0, D_pad - D_in)))
    if H_pad != H:
        w1 = jnp.pad(w1, ((0, 0), (0, H_pad - H)))
        b1 = jnp.pad(b1, ((0, 0), (0, H_pad - H)))
        w2 = jnp.pad(w2, ((0, H_pad - H), (0, 0)))   # zero rows: padded z cols contribute 0
    if B_pad != B:
        x = jnp.pad(x, ((0, B_pad - B), (0, 0)))

    # Decoder output tile width: largest of {512, 256, 128} dividing D_pad.
    TN = next(t for t in (512, 256, 128) if D_pad % t == 0)
    grid = (B_pad // TB, D_pad // TN)

    # Weights loaded once -> pre-cast to bf16 in the wrapper is fine; biases stay f32.
    w1_bf = w1.astype(jnp.bfloat16)
    w2_bf = w2.astype(jnp.bfloat16)
    b1_f32 = b1.astype(jnp.float32)
    b2_f32 = b2.astype(jnp.float32)

    itemsize_out = jnp.dtype(out_dtype).itemsize
    # VMEM footprint: single-buffered resident w1/b1, double-buffered streaming tiles,
    # plus the z scratch.  Generous headroom, capped below v7x's 64 MiB physical.
    footprint = (
        D_pad * H_pad * 2 + H_pad * 4              # w1 (bf16, 1 buf) + b1 (f32, 1 buf)
        + 2 * (H_pad * TN * 2 + TN * 4)            # w2 / b2 tiles (2 bufs each)
        + 2 * TB * D_pad * 4                       # x tile (f32, 2 bufs)
        + 2 * TB * TN * itemsize_out               # out tile (2 bufs)
        + TB * H_pad * 2                           # z scratch (bf16)
    )
    vmem_limit = int(min(max(2 * footprint, 16 << 20), 64 << 20))

    cost = pl.CostEstimate(
        flops=4 * B_pad * D_pad * H_pad,            # encoder + decoder matmuls
        transcendentals=B_pad * H_pad,              # exp in the sigmoid
        bytes_accessed=(B_pad * D_pad * 4           # x (f32, read in-kernel)
                        + D_pad * H_pad * 2 + H_pad * 4
                        + H_pad * D_pad * 2 + D_pad * 4
                        + B_pad * D_pad * itemsize_out),
    )

    out = pl.pallas_call(
        autorec_kernel,
        out_shape=jax.ShapeDtypeStruct((B_pad, D_pad), out_dtype),
        grid=grid,
        in_specs=[
            # x streamed per batch tile (f32; cast to bf16 inside the kernel).
            pl.BlockSpec((TB, D_pad), lambda i, j: (i, 0)),
            # Resident encoder weight/bias: constant block index -> single buffer.
            pl.BlockSpec((D_pad, H_pad), lambda i, j: (0, 0),
                         pipeline_mode=pl.Buffered(1)),
            pl.BlockSpec((1, H_pad), lambda i, j: (0, 0),
                         pipeline_mode=pl.Buffered(1)),
            # Decoder weight/bias tiled along D_in, streamed over j (default 2 bufs).
            pl.BlockSpec((H_pad, TN), lambda i, j: (0, j)),
            pl.BlockSpec((1, TN), lambda i, j: (0, j)),
        ],
        out_specs=pl.BlockSpec((TB, TN), lambda i, j: (i, j)),
        scratch_shapes=[pltpu.VMEM((TB, H_pad), jnp.bfloat16)],
        compiler_params=pltpu.CompilerParams(
            dimension_semantics=("parallel", "arbitrary"),
            vmem_limit_bytes=vmem_limit),
        cost_estimate=cost,
    )(x, w1_bf, b1_f32, w2_bf, b2_f32)

    return out[:B, :D_in]


def reference_forward_bf16(x, w1, b1, w2, b2):
    """Reference with the same explicit bf16 MXU-operand casting as the kernel."""
    xb = x.astype(jnp.bfloat16)
    w1b = w1.astype(jnp.bfloat16)
    w2b = w2.astype(jnp.bfloat16)
    z = jnp.dot(xb, w1b, preferred_element_type=jnp.float32) + b1
    z = jax.nn.sigmoid(z)
    y = jnp.dot(z.astype(jnp.bfloat16), w2b, preferred_element_type=jnp.float32) + b2
    return y.astype(x.dtype)


if __name__ == "__main__":
    # Small shapes consistent with the module: batch=8, input_size=256, hidden=128
    B, D_in, H = 8, 256, 128

    key = jax.random.PRNGKey(0)
    kx, k1, k2, k3, k4 = jax.random.split(key, 5)

    x = jax.random.normal(kx, (B, D_in), dtype=jnp.float32)

    # Deterministic param init (uniform, ~PyTorch Linear default scale)
    lim1 = 1.0 / jnp.sqrt(D_in)
    lim2 = 1.0 / jnp.sqrt(H)
    w1 = jax.random.uniform(k1, (D_in, H), minval=-lim1, maxval=lim1, dtype=jnp.float32)
    b1 = jax.random.uniform(k2, (1, H), minval=-lim1, maxval=lim1, dtype=jnp.float32)
    w2 = jax.random.uniform(k3, (H, D_in), minval=-lim2, maxval=lim2, dtype=jnp.float32)
    b2 = jax.random.uniform(k4, (1, D_in), minval=-lim2, maxval=lim2, dtype=jnp.float32)

    out = autorec_forward(x, w1, b1, w2, b2)
    out = jax.block_until_ready(out)

    ref = reference_forward_bf16(x, w1, b1, w2, b2)
    assert out.shape == (B, D_in)
    # bf16 MXU inputs + approx reciprocal => compare at matching precision
    assert jnp.allclose(out, ref, atol=1e-2, rtol=1e-2), float(jnp.max(jnp.abs(out - ref)))

    # TODO(synk): training-mode masking `prediction * input.abs().sign()` and
    # dropout are not applied (eval-mode forward, dropout=0.0).
    print("KERNEL_OK")
</pallas_src>

<mosaic_0001>
module attributes {stable_mosaic.version = 11 : i64} {
  func.func @autorec_kernel(%arg0: i32, %arg1: i32, %arg2: memref<16x256xf32, #tpu.memory_space<vmem>>, %arg3: memref<256x128xbf16, #tpu.memory_space<vmem>>, %arg4: memref<1x128xf32, #tpu.memory_space<vmem>>, %arg5: memref<128x256xbf16, #tpu.memory_space<vmem>>, %arg6: memref<1x256xf32, #tpu.memory_space<vmem>>, %arg7: memref<16x256xf32, #tpu.memory_space<vmem>>, %arg8: memref<16x128xbf16, #tpu.memory_space<vmem>>) attributes {dimension_semantics = [#tpu.dimension_semantics<parallel>, #tpu.dimension_semantics<arbitrary>], iteration_bounds = array<i64: 1, 1>, scalar_prefetch = 0 : i64, scratch_operands = 1 : i64, tpu.core_type = #tpu.core_type<tc>, window_params = [{transform_indices = @transform_0, window_bounds = array<i64: 16, 256>}, {pipeline_mode = #tpu.pipeline_mode<synchronous>, transform_indices = @transform_1, window_bounds = array<i64: 256, 128>}, {pipeline_mode = #tpu.pipeline_mode<synchronous>, transform_indices = @transform_2, window_bounds = array<i64: 1, 128>}, {transform_indices = @transform_3, window_bounds = array<i64: 128, 256>}, {transform_indices = @transform_4, window_bounds = array<i64: 1, 256>}, {transform_indices = @transform_5, window_bounds = array<i64: 16, 256>}]} {
    %c0_i32 = arith.constant 0 : i32
    %0 = arith.cmpi eq, %arg1, %c0_i32 : i32
    %1 = arith.extui %0 : i1 to i32
    %c0_i32_0 = arith.constant 0 : i32
    %2 = arith.cmpi ne, %1, %c0_i32_0 : i32
    scf.if %2 {
      %c0_8 = arith.constant 0 : index
      %c0_9 = arith.constant 0 : index
      %10 = vector.load %arg2[%c0_8, %c0_9] : memref<16x256xf32, #tpu.memory_space<vmem>>, vector<16x256xf32>
      %11 = arith.truncf %10 : vector<16x256xf32> to vector<16x256xbf16>
      %c0_10 = arith.constant 0 : index
      %c0_11 = arith.constant 0 : index
      %12 = vector.load %arg3[%c0_10, %c0_11] : memref<256x128xbf16, #tpu.memory_space<vmem>>, vector<256x128xbf16>
      %cst_12 = arith.constant dense<0.000000e+00> : vector<16x128xf32>
      %13 = tpu.matmul %11, %12, %cst_12 {dimension_numbers = #tpu.dot_dimension_numbers<[1], [0], [0], [1], [0, 0, 1, 1], [], []>} : vector<16x256xbf16>, vector<256x128xbf16>, vector<16x128xf32> -> vector<16x128xf32>
      %c0_13 = arith.constant 0 : index
      %c0_14 = arith.constant 0 : index
      %14 = vector.load %arg4[%c0_13, %c0_14] : memref<1x128xf32, #tpu.memory_space<vmem>>, vector<1x128xf32>
      %15 = vector.broadcast %14 : vector<1x128xf32> to vector<16x128xf32>
      %16 = arith.addf %13, %15 : vector<16x128xf32>
      %cst_15 = arith.constant 0.000000e+00 : f32
      %17 = vector.broadcast %cst_15 : f32 to vector<16x128xf32>
      %18 = arith.subf %17, %16 : vector<16x128xf32>
      %19 = math.exp %18 : vector<16x128xf32>
      %cst_16 = arith.constant 1.000000e+00 : f32
      %20 = vector.broadcast %cst_16 : f32 to vector<16x128xf32>
      %21 = arith.addf %20, %19 : vector<16x128xf32>
      %22 = tpu.reciprocal %21 {approx = true} : vector<16x128xf32> -> vector<16x128xf32>
      %23 = arith.truncf %22 : vector<16x128xf32> to vector<16x128xbf16>
      %c0_17 = arith.constant 0 : index
      %c0_18 = arith.constant 0 : index
      %24 = vector.load %arg8[%c0_17, %c0_18] : memref<16x128xbf16, #tpu.memory_space<vmem>>, vector<16x128xbf16>
      tpu.vector_store %arg8[%c0_17, %c0_18], %23 {strides = array<i32>} : memref<16x128xbf16, #tpu.memory_space<vmem>>, vector<16x128xbf16>,
    } else {
    }
    %c0 = arith.constant 0 : index
    %c0_1 = arith.constant 0 : index
    %3 = vector.load %arg8[%c0, %c0_1] : memref<16x128xbf16, #tpu.memory_space<vmem>>, vector<16x128xbf16>
    %c0_2 = arith.constant 0 : index
    %c0_3 = arith.constant 0 : index
    %4 = vector.load %arg5[%c0_2, %c0_3] : memref<128x256xbf16, #tpu.memory_space<vmem>>, vector<128x256xbf16>
    %cst = arith.constant dense<0.000000e+00> : vector<16x256xf32>
    %5 = tpu.matmul %3, %4, %cst {dimension_numbers = #tpu.dot_dimension_numbers<[1], [0], [0], [1], [0, 0, 1, 1], [], []>} : vector<16x128xbf16>, vector<128x256xbf16>, vector<16x256xf32> -> vector<16x256xf32>
    %c0_4 = arith.constant 0 : index
    %c0_5 = arith.constant 0 : index
    %6 = vector.load %arg6[%c0_4, %c0_5] : memref<1x256xf32, #tpu.memory_space<vmem>>, vector<1x256xf32>
    %7 = vector.broadcast %6 : vector<1x256xf32> to vector<16x256xf32>
    %8 = arith.addf %5, %7 : vector<16x256xf32>
    %c0_6 = arith.constant 0 : index
    %c0_7 = arith.constant 0 : index
    %9 = vector.load %arg7[%c0_6, %c0_7] : memref<16x256xf32, #tpu.memory_space<vmem>>, vector<16x256xf32>
    tpu.vector_store %arg7[%c0_6, %c0_7], %8 {strides = array<i32>} : memref<16x256xf32, #tpu.memory_space<vmem>>, vector<16x256xf32>,
    return
  }
  func.func @transform_0(%arg0: i32, %arg1: i32) -> (i32, i32) {
    %c0_i32 = arith.constant 0 : i32
    %c0_i32_0 = arith.constant 0 : i32
    return %arg0, %c0_i32 : i32, i32
  }
  func.func @transform_1(%arg0: i32, %arg1: i32) -> (i32, i32) {
    %c0_i32 = arith.constant 0 : i32
    %c0_i32_0 = arith.constant 0 : i32
    %c0_i32_1 = arith.constant 0 : i32
    return %c0_i32, %c0_i32_0 : i32, i32
  }
  func.func @transform_2(%arg0: i32, %arg1: i32) -> (i32, i32) {
    %c0_i32 = arith.constant 0 : i32
    %c0_i32_0 = arith.constant 0 : i32
    %c0_i32_1 = arith.constant 0 : i32
    return %c0_i32, %c0_i32_0 : i32, i32
  }
  func.func @transform_3(%arg0: i32, %arg1: i32) -> (i32, i32) {
    %c0_i32 = arith.constant 0 : i32
    %c0_i32_0 = arith.constant 0 : i32
    return %c0_i32, %arg1 : i32, i32
  }
  func.func @transform_4(%arg0: i32, %arg1: i32) -> (i32, i32) {
    %c0_i32 = arith.constant 0 : i32
    %c0_i32_0 = arith.constant 0 : i32
    return %c0_i32, %arg1 : i32, i32
  }
  func.func @transform_5(%arg0: i32, %arg1: i32) -> (i32, i32) {
    %c0_i32 = arith.constant 0 : i32
    return %arg0, %arg1 : i32, i32
  }
}

</mosaic_0001>

<bundles_post_ra>
// kernel: tpu_custom_call.1
= control target key start
LH: loop header
LB: loop body
LE: loop exit
PB: predicated region body
PF: predicated region fallthrough
CT: control target
= control target key end

     0   :  { %10 = vsyncpa [#allocation4], 0  ;;  %s769_s0 = inlined_call_operand.hbm [shape: f32[16,256], index: 0, kind: input, shape index: {}]   ;;  %s770_s1 = inlined_call_operand.hbm [shape: bf16[256,128], index: 1, kind: input, shape index: {}]   ;;  %s771_s2 = inlined_call_operand.vmem [shape: f32[1,128], index: 2, kind: input, shape index: {}]   ;;  %s772_s3 = inlined_call_operand.hbm [shape: bf16[128,256], index: 3, kind: input, shape index: {}]   ;;  %s773_s4 = inlined_call_operand.vmem [shape: f32[1,256], index: 4, kind: input, shape index: {}]   ;;  %s774_s5 = inlined_call_operand.hbm [shape: f32[16,256], index: 5, kind: output, shape index: {}]  }
   0x1   :  { %11 = vsyncpa [#allocation7], 0  ;;  %s30_s20 = sshll.u32 %s770_s1, 4  ;;  %s31_s20 = int_to_ptr.hbm [resolvable:$true] %s30_s20 }
   0x2   :  { %12 = vsyncpa [#allocation5], 0  ;;  %s705_s21 = smov [#allocation6]   ;;  %s17_s25 = sshll.u32 %s769_s0, 4  ;;  %s18_s25 = int_to_ptr.hbm [resolvable:$true] %s17_s25 }
   0x3   :  { %s32_s22 = sshll.u32 %s705_s21, 4  ;;  %s706_s26 = smov 64   ;;  %s33_s22 = int_to_ptr.vmem [resolvable:$true] %s32_s22 }
   0x4   :  { %s707_s27 = smov 4   ;;  %s708_s28 = smov [#allocation3]  }
   0x5   :  { %38 = dma.hbm_to_vmem [thread:$0]  %s31_s20, 2048, %s33_s22, [#allocation7], %s706_s26, %s706_s26, %s707_s27  }
   0x6   :  { %s19_s29 = sshll.u32 %s708_s28, 4  ;;  %s709_s30 = smov 256   ;;  %s20_s29 = int_to_ptr.vmem [resolvable:$true] %s19_s29 }
   0x7   :  { %s710_s6 = smov 16   ;;  %s45_s8 = sshll.u32 %s772_s3, 4  ;;  %s46_s8 = int_to_ptr.hbm [resolvable:$true] %s45_s8 }
   0x8   :  { %25 = dma.hbm_to_vmem [thread:$0]  %s18_s25, 512, %s20_s29, [#allocation4], %s709_s30, %s709_s30, %s710_s6  }
   0x9   :  { %s711_s9 = smov [#allocation8]   ;;  %s712_s10 = smov 128  }
   0xa   :  { %s47_s0 = sshll.u32 %s711_s9, 4  ;;  %s713_s11 = smov 8   ;;  %s48_s0 = int_to_ptr.vmem [resolvable:$true] %s47_s0 }
   0xb   :  { %53 = dma.hbm_to_vmem [thread:$0]  %s46_s8, 2048, %s48_s0, [#allocation7], %s712_s10, %s712_s10, %s713_s11  }
   0xc   :  { %699 = dma.done.wait [#allocation4], 512  }
   0xd   :  { %700 = vsyncadd [#allocation4], 4294966784 }
   0xe   :  { %701 = dma.done.wait [#allocation7], 4096  }
   0xf   :  { %702 = vsyncadd [#allocation7], 4294963200  ;;  %v553_v0 = vld [vmem:[#allocation6 + $0x38] sm:$0xff]  ;;  %v552_v2 = vld [vmem:[#allocation6 + $0x30] sm:$0xff]  ;;  %s714_s14 = smov [#allocation9]   ;;  %s400_s18 = sshll.u32 %s774_s5, 4  ;;  %s401_s18 = int_to_ptr.hbm [resolvable:$true] %s400_s18 }
  0x10   :  { %v561_v1 = vld [vmem:[#allocation6 + $0x78] sm:$0xff]  ;;  %210 = vmatpush.bf16.msra.mxu0 %v553_v0  ;;  %v560_v3 = vld [vmem:[#allocation6 + $0x70] sm:$0xff]  ;;  %v551_v4 = vld [vmem:[#allocation6 + $0x28] sm:$0xff]  ;;  %s398_s15 = sshll.u32 %s714_s14, 4  ;;  %s399_s15 = int_to_ptr.vmem [resolvable:$true] %s398_s15 }
  0x11   :  { %224 = vmatpush.bf16.msra.mxu1 %v561_v1  ;;  %v559_v5 = vld [vmem:[#allocation6 + $0x68] sm:$0xff]  ;;  %v550_v6 = vld [vmem:[#allocation6 + $0x20] sm:$0xff]  ;;  %v549_v8 = vld [vmem:[#allocation6 + $0x18] sm:$0xff] }
  0x12   :  { %v558_v7 = vld [vmem:[#allocation6 + $0x60] sm:$0xff]  ;;  %v557_v9 = vld [vmem:[#allocation6 + $0x58] sm:$0xff]  ;;  %v548_v10 = vld [vmem:[#allocation6 + $0x10] sm:$0xff] }
  0x13   :  { %v556_v11 = vld [vmem:[#allocation6 + $0x50] sm:$0xff]  ;;  %v547_v12 = vld [vmem:[#allocation6 + $0x8] sm:$0xff]  ;;  %v546_v14 = vld [vmem:[#allocation6] sm:$0xff] }
  0x14   :  { %211 = vmatpush.bf16.msra.mxu0 %v552_v2  ;;  %v555_v13 = vld [vmem:[#allocation6 + $0x48] sm:$0xff]  ;;  %v554_v15 = vld [vmem:[#allocation6 + $0x40] sm:$0xff]  ;;  %v74_v17 = vld [vmem:[#allocation3 + $0x10] sm:$0xff] }
  0x15   :  { %225 = vmatpush.bf16.msra.mxu1 %v560_v3  ;;  %v72_v16 = vld [vmem:[#allocation3] sm:$0xff]  ;;  %v73_v18 = vld [vmem:[#allocation3 + $0x8] sm:$0xff]  ;;  %v75_v19 = vld [vmem:[#allocation3 + $0x18] sm:$0xff] }
  0x16   :  { %v76_v20 = vpack.c.bf16 %v74_v17, %v72_v16  ;;  %v77_v21 = vpack.c.bf16 %v75_v19, %v73_v18  ;;  %v540_v22 = vld [vmem:[#allocation8 + $0x70] sm:$0xf]  ;;  %v578_v23 = vld [vmem:[#allocation8 + $0x74] sm:$0xf0]  ;;  %v577_v24 = vld [vmem:[#allocation8 + $0x74] sm:$0xf] }
  0x17   :  { %v541_v25 = vor.u32 %v578_v23, %v540_v22  ;;  %v542_v26 = vld [vmem:[#allocation8 + $0x78] sm:$0xf0]  ;;  %v532_v28 = vld [vmem:[#allocation8 + $0x60] sm:$0xf]  ;;  %v576_v29 = vld [vmem:[#allocation8 + $0x64] sm:$0xf0] }
  0x18   :  { %212 = vmatpush.bf16.msra.mxu0 %v551_v4  ;;  %v545_v27 = vor.u32 %v577_v24, %v542_v26  ;;  %v575_v30 = vld [vmem:[#allocation8 + $0x64] sm:$0xf]  ;;  %v533_v31 = vor.u32 %v576_v29, %v532_v28  ;;  %v534_v32 = vld [vmem:[#allocation8 + $0x68] sm:$0xf0]  ;;  %v524_v34 = vld [vmem:[#allocation8 + $0x50] sm:$0xf] }
  0x19   :  { %226 = vmatpush.bf16.msra.mxu1 %v559_v5  ;;  %362 = vmatpush.bf16.msra.mxu2 %v541_v25  ;;  %v537_v33 = vor.u32 %v575_v30, %v534_v32  ;;  %v574_v35 = vld [vmem:[#allocation8 + $0x54] sm:$0xf0]  ;;  %v573_v36 = vld [vmem:[#allocation8 + $0x54] sm:$0xf]  ;;  %v526_v38 = vld [vmem:[#allocation8 + $0x58] sm:$0xf0] }
  0x1a   :  { %376 = vmatpush.bf16.msra.mxu3 %v545_v27  ;;  %v525_v37 = vor.u32 %v574_v35, %v524_v34  ;;  %v529_v39 = vor.u32 %v573_v36, %v526_v38  ;;  %v516_v40 = vld [vmem:[#allocation8 + $0x40] sm:$0xf]  ;;  %v572_v41 = vld [vmem:[#allocation8 + $0x44] sm:$0xf0]  ;;  %v571_v42 = vld [vmem:[#allocation8 + $0x44] sm:$0xf] }
  0x1b   :  { %v517_v43 = vor.u32 %v572_v41, %v516_v40  ;;  %v518_v44 = vld [vmem:[#allocation8 + $0x48] sm:$0xf0]  ;;  %v508_v46 = vld [vmem:[#allocation8 + $0x30] sm:$0xf]  ;;  %v570_v47 = vld [vmem:[#allocation8 + $0x34] sm:$0xf0] }
  0x1c   :  { %213 = vmatpush.bf16.msra.mxu0 %v550_v6  ;;  %v521_v45 = vor.u32 %v571_v42, %v518_v44  ;;  %v569_v48 = vld [vmem:[#allocation8 + $0x34] sm:$0xf]  ;;  %v509_v49 = vor.u32 %v570_v47, %v508_v46  ;;  %v510_v50 = vld [vmem:[#allocation8 + $0x38] sm:$0xf0]  ;;  %v594_v52 = vld [vmem:[%s771_s2] ss:$0 sm:$0xff] }
  0x1d   :  { %227 = vmatpush.bf16.msra.mxu1 %v558_v7  ;;  %363 = vmatpush.bf16.msra.mxu2 %v533_v31  ;;  %v513_v51 = vor.u32 %v569_v48, %v510_v50  ;;  %v500_v53 = vld [vmem:[#allocation8 + $0x20] sm:$0xf]  ;;  %v568_v54 = vld [vmem:[#allocation8 + $0x24] sm:$0xf0]  ;;  %v567_v55 = vld [vmem:[#allocation8 + $0x24] sm:$0xf] }
  0x1e   :  { %377 = vmatpush.bf16.msra.mxu3 %v537_v33  ;;  %v501_v56 = vor.u32 %v568_v54, %v500_v53  ;;  %v502_v57 = vld [vmem:[#allocation8 + $0x28] sm:$0xf0]  ;;  %v492_v62 = vld [vmem:[#allocation8 + $0x10] sm:$0xf]  ;;  %v566_v63 = vld [vmem:[#allocation8 + $0x14] sm:$0xf0] }
  0x1f   :  { %v505_v60 = vor.u32 %v567_v55, %v502_v57  ;;  %v565_v0 = vld [vmem:[#allocation8 + $0x14] sm:$0xf]  ;;  %v493_v2 = vor.u32 %v566_v63, %v492_v62  ;;  %v494_v3 = vld [vmem:[#allocation8 + $0x18] sm:$0xf0]  ;;  %v484_v4 = vld [vmem:[#allocation8] sm:$0xf] }
  0x20   :  { %214 = vmatpush.bf16.msra.mxu0 %v549_v8  ;;  %v564_v5 = vld [vmem:[#allocation8 + $0x4] sm:$0xf0]  ;;  %v497_v6 = vor.u32 %v565_v0, %v494_v3  ;;  %v563_v7 = vld [vmem:[#allocation8 + $0x4] sm:$0xf]  ;;  %v486_v8 = vld [vmem:[#allocation8 + $0x8] sm:$0xf0] }
  0x21   :  { %228 = vmatpush.bf16.msra.mxu1 %v557_v9  ;;  %364 = vmatpush.bf16.msra.mxu2 %v525_v37  ;;  %v270_v27 = vld [vmem:[%s773_s4] sm:$0x3] }
  0x22   :  { %378 = vmatpush.bf16.msra.mxu3 %v529_v39  ;;  %v272_v28 = vperm.slane %v270_v27, 0  ;;  %v273_v29 = vperm.slane %v270_v27, 1 }
  0x24   :  { %215 = vmatpush.bf16.msra.mxu0 %v548_v10  ;;  %v485_v10 = vor.u32 %v564_v5, %v484_v4 }
  0x25   :  { %229 = vmatpush.bf16.msra.mxu1 %v556_v11  ;;  %365 = vmatpush.bf16.msra.mxu2 %v517_v43  ;;  %v489_v11 = vor.u32 %v563_v7, %v486_v8 }
  0x26   :  { %379 = vmatpush.bf16.msra.mxu3 %v521_v45 }
  0x28   :  { %216 = vmatpush.bf16.msra.mxu0 %v547_v12 }
  0x29   :  { %230 = vmatpush.bf16.msra.mxu1 %v555_v13  ;;  %366 = vmatpush.bf16.msra.mxu2 %v509_v49 }
  0x2a   :  { %380 = vmatpush.bf16.msra.mxu3 %v513_v51 }
  0x2c   :  { %217 = vmatpush.bf16.msra.mxu0 %v546_v14 }
  0x2d   :  { %231 = vmatpush.bf16.msra.mxu1 %v554_v15  ;;  %367 = vmatpush.bf16.msra.mxu2 %v501_v56 }
  0x2e   :  { %381 = vmatpush.bf16.msra.mxu3 %v505_v60 }
  0x2f   :  { %218 = vmatmul.bf16.vlgmr.msra.gmra.mxu0 %v76_v20 }
  0x30   :  { %232 = vmatmul.bf16.vlgmr.msra.gmra.mxu1 %v77_v21 }
  0x31   :  { %368 = vmatpush.bf16.msra.mxu2 %v493_v2 }
  0x32   :  { %382 = vmatpush.bf16.msra.mxu3 %v497_v6 }
  0x35   :  { %369 = vmatpush.bf16.msra.mxu2 %v485_v10 }
  0x36   :  { %383 = vmatpush.bf16.msra.mxu3 %v489_v11 }
  0xac   :  { %v219_v58 = vpop.f32.mrf.mxu0 }
  0xad   :  { %v233_v59 = vpop.f32.mrf.mxu1  ;;  %v220_v61 = vadd.f32 %v594_v52, %v219_v58 }
  0xaf   :  { %v234_v1 = vadd.f32 %v233_v59, %v220_v61 }
  0xb1   :  { %v238_v9 = vsub.f32 0.0, %v234_v1 }
  0xb3   :  { %v240_v12 = vmul.f32 1.442695, %v238_v9 }
  0xb4   :  { %v221_v13 = vpop.f32.mrf.mxu0 }
  0xb5   :  { %v222_v14 = vadd.f32 %v594_v52, %v221_v13  ;;  %v235_v15 = vpop.f32.mrf.mxu1  ;;  %595 = vpow2.f32 %v240_v12 }
  0xb7   :  { %v236_v16 = vadd.f32 %v235_v15, %v222_v14 }
  0xb9   :  { %v239_v17 = vsub.f32 0.0, %v236_v16 }
  0xbb   :  { %v242_v18 = vmul.f32 1.442695, %v239_v17  ;;  %v596_v19 = vpop.eup %595 }
  0xbc   :  { %v244_v20 = vadd.f32 1.0, %v596_v19 }
  0xbd   :  { %597 = vpow2.f32 %v242_v18 }
  0xbe   :  { %599 = vrcp.f32 %v244_v20 }
  0xc3   :  { %v598_v21 = vpop.eup %597 }
  0xc4   :  { %v245_v22 = vadd.f32 1.0, %v598_v21  ;;  %v600_v23 = vpop.eup %599 }
  0xc6   :  { %601 = vrcp.f32 %v245_v22 }
  0xcc   :  { %v602_v24 = vpop.eup %601 }
  0xcd   :  { %v582_v25 = vpack.c.bf16 %v602_v24, %v600_v23 }
  0xcf   :  { %583 = vst [vmem:[#allocation2] sm:$0xff] %v582_v25  }
  0xd6   :  { %v562_v26 = vld [vmem:[#allocation2] sm:$0xff] }
  0xd7   :  { %370 = vmatmul.bf16.vlgmr.msra.gmra.mxu2 %v562_v26  ;;  %384 = vmatmul.bf16.vlgmr.msra.gmra.mxu3 %v562_v26 }
 0x15a   :  { %v371_v30 = vpop.f32.mrf.mxu2  ;;  %v385_v31 = vpop.f32.mrf.mxu3 }
 0x15b   :  { %v372_v32 = vadd.f32 %v371_v30, %v272_v28  ;;  %v386_v33 = vadd.f32 %v385_v31, %v273_v29 }
 0x15d   :  { %390 = vst [vmem:[#allocation9] sm:$0xff] %v372_v32 }
 0x15e   :  { %391 = vst [vmem:[#allocation9 + $0x8] sm:$0xff] %v386_v33 }
 0x162   :  { %v373_v34 = vpop.f32.mrf.mxu2  ;;  %v387_v35 = vpop.f32.mrf.mxu3 }
 0x163   :  { %v374_v36 = vadd.f32 %v373_v34, %v272_v28  ;;  %v388_v37 = vadd.f32 %v387_v35, %v273_v29 }
 0x165   :  { %392 = vst [vmem:[#allocation9 + $0x10] sm:$0xff] %v374_v36 }
 0x166   :  { %393 = vst [vmem:[#allocation9 + $0x18] sm:$0xff] %v388_v37 }
 0x167   :  { %406 = dma.vmem_to_hbm [thread:$0]  %s399_s15, 512, %s401_s18, [#allocation5], %s709_s30, %s709_s30, %s710_s6  }
 0x168   :  { %703 = dma.done.wait [#allocation5], 512  }
 0x169   :  { %704 = vsyncadd [#allocation5], 4294966784 }
 0x16a   :  { %411 = vsyncpa [#allocation4], 1 }
 0x16b   :  { %412 = vsyncpa [#allocation7], 1 }
 0x16c   :  { %413 = vsyncpa [#allocation5], 1 }

</bundles_post_ra>
